<compile_context>
chip_gen: v7x
topology: tpu7x:2x2x1
jax: 0.10.0
libtpu: 0.0.40
codegen_flags: <defaults>
</compile_context>

<pallas_src>
import jax
import jax.numpy as jnp
from jax.experimental import pallas as pl
from jax.experimental.pallas import tpu as pltpu


_LANE = 128
# Below this many bytes per input the pallas_call fixed cost dominates and the
# fused XLA elementwise op is strictly faster.
_SMALL_INPUT_BYTES = 128 * 1024


def _fusion2_ref(x, y):
    """Pure-jnp reference / fallback: -(x - y)**2 + relu(x + y) (f32 internal)."""
    xf = x.astype(jnp.float32)
    yf = y.astype(jnp.float32)
    d = xf - yf
    s = xf + yf
    return (jnp.maximum(s, 0.0) - d * d).astype(x.dtype)


def _fusion2_kernel(x_ref, y_ref, o_ref):
    # Upcast to f32 inside the kernel (free: kernel is HBM-bound, large VALU
    # slack on all generations); single cast back at the store.
    x = x_ref[...].astype(jnp.float32)
    y = y_ref[...].astype(jnp.float32)
    d = x - y
    s = x + y
    o_ref[...] = (jnp.maximum(s, 0.0) - d * d).astype(o_ref.dtype)


def _sublane_multiple(dtype) -> int:
    itemsize = jnp.dtype(dtype).itemsize
    if itemsize == 4:
        return 8
    if itemsize == 2:
        return 16
    raise ValueError(f"fusion2 supports 2- or 4-byte floating dtypes, got {dtype}")


def _round_up(a: int, m: int) -> int:
    return ((a + m - 1) // m) * m


def _tpu_generation() -> str:
    try:
        kind = jax.devices()[0].device_kind.lower()
    except Exception:
        return "unknown"
    if "v5 lite" in kind or "v5lite" in kind or "v5e" in kind:
        return "v5e"
    if "v6" in kind:
        return "v6e"
    if "v7" in kind or "7x" in kind:
        return "v7x"
    return "unknown"


def _block_budget():
    """Returns (bytes per block, vmem_limit_bytes or None) per TPU generation.

    The pipeline holds 3 arrays (x, y, out) x 2 buffers per block, so the
    scoped-VMEM footprint is ~6x the block budget. The binding constraint is
    the scoped-VMEM default (16 MiB v5e, 32 MiB v6e/v7x), not physical VMEM.
    """
    gen = _tpu_generation()
    if gen == "v5e":
        return 2 << 20, None          # 12 MiB pipelined, under 16 MiB default
    if gen == "v6e":
        return 4 << 20, None          # 24 MiB pipelined, under 32 MiB default
    if gen == "v7x":
        return 6 << 20, 50 << 20      # 36 MiB pipelined, raise scoped limit
    return 2 << 20, None              # unknown generation: stay conservative


def _fusion2_slab(xf, yf, block_bytes, vmem_limit):
    """Pallas over a lane-dense (rows, 128) slab. rows need not be a multiple
    of the sublane tile (partial last block is masked by Pallas)."""
    rows = xf.shape[0]
    dtype = xf.dtype
    sub = _sublane_multiple(dtype)
    itemsize = jnp.dtype(dtype).itemsize

    # Byte-budget block sizing, rounded down to the dtype's sublane multiple.
    budget_rows = max(sub, (block_bytes // (_LANE * itemsize)) // sub * sub)
    # Guarantee >= 4 roughly even grid steps before clamping to the budget so
    # both v7x TensorCores get work and DMA/compute overlap is never degenerate.
    even_rows = _round_up(pl.cdiv(rows, 4), sub)
    row_tile = max(sub, min(budget_rows, even_rows))

    grid = (pl.cdiv(rows, row_tile),)
    spec = pl.BlockSpec((row_tile, _LANE), lambda i: (i, 0))

    return pl.pallas_call(
        _fusion2_kernel,
        out_shape=jax.ShapeDtypeStruct((rows, _LANE), dtype),
        grid_spec=pltpu.PrefetchScalarGridSpec(
            num_scalar_prefetch=0,
            grid=grid,
            in_specs=[spec, spec],
            out_specs=spec,
        ),
        compiler_params=pltpu.CompilerParams(
            # Parallel grid axis: v7x's two TensorCores each take a shard.
            dimension_semantics=("parallel",),
            vmem_limit_bytes=vmem_limit,
        ),
    )(xf, yf)


def fusion2(x, y):
    """Elementwise Fusion2: -(x - y)**2 + relu(x + y). x, y same shape/dtype."""
    assert x.shape == y.shape and x.dtype == y.dtype
    if not jnp.issubdtype(x.dtype, jnp.floating):
        raise ValueError("fusion2 supports floating dtypes (f32 / bf16) only")

    orig_shape = x.shape
    n = x.size
    itemsize = jnp.dtype(x.dtype).itemsize

    # Tiny inputs: fused XLA elementwise op beats pallas_call fixed cost.
    if n * itemsize < _SMALL_INPUT_BYTES:
        return _fusion2_ref(x, y)

    block_bytes, vmem_limit = _block_budget()

    if n % _LANE == 0:
        # Common case: free reshape to a lane-dense (rows, 128) slab; the only
        # HBM traffic is one read of x, y and one write of the output.
        rows = n // _LANE
        out = _fusion2_slab(
            x.reshape(rows, _LANE), y.reshape(rows, _LANE), block_bytes, vmem_limit
        )
        return out.reshape(orig_shape)

    # Lane-misaligned: Pallas on the aligned bulk; the <128-element tail is a
    # tiny plain-jnp expression (no full-array jnp.pad + post-slice round trip).
    n_bulk = (n // _LANE) * _LANE
    xr = x.reshape(-1)
    yr = y.reshape(-1)
    bulk = _fusion2_slab(
        xr[:n_bulk].reshape(-1, _LANE),
        yr[:n_bulk].reshape(-1, _LANE),
        block_bytes,
        vmem_limit,
    ).reshape(-1)
    tail = _fusion2_ref(xr[n_bulk:], yr[n_bulk:])
    return jnp.concatenate([bulk, tail]).reshape(orig_shape)


def init_linear_sum2_params(key, input_dims, output_dim, mm_dim=1):
    """Deterministic init of the (unused-in-forward) LinearSum2 parameters."""
    # TODO(synk): LinearSum2 is constructed by Fusion2.__init__ but never used
    # in Fusion2.forward, so it is only initialized here for shape fidelity.
    k0, k1, k2 = jax.random.split(key, 3)
    return {
        "linear0_w": jax.random.normal(k0, (mm_dim, input_dims[0]), jnp.float32) * 0.02,
        "linear0_b": jnp.zeros((mm_dim,), jnp.float32),
        "linear1_w": jax.random.normal(k1, (mm_dim, input_dims[1]), jnp.float32) * 0.02,
        "linear1_b": jnp.zeros((mm_dim,), jnp.float32),
        "linear_out_w": jax.random.normal(k2, (output_dim, mm_dim), jnp.float32) * 0.02,
        "linear_out_b": jnp.zeros((output_dim,), jnp.float32),
    }


if __name__ == "__main__":
    key = jax.random.PRNGKey(0)
    kx, ky, kp = jax.random.split(key, 3)

    # Parameters of the unused LinearSum2 submodule (shape fidelity only).
    _ = init_linear_sum2_params(kp, input_dims=(32, 32), output_dim=16, mm_dim=1)

    # 1) Tiny NCHW input -> fused-XLA bypass path.
    x = jax.random.normal(kx, (2, 4, 16, 16), jnp.float32)
    y = jax.random.normal(ky, (2, 4, 16, 16), jnp.float32)
    z = jax.block_until_ready(fusion2(x, y))
    z_ref = -(x - y) ** 2 + jnp.maximum(x + y, 0.0)
    assert jnp.allclose(z, z_ref, atol=1e-6, rtol=1e-6)

    # 2) Lane-aligned input large enough for the Pallas path (multi-step grid).
    x2 = jax.random.normal(kx, (2, 4, 64, 128), jnp.float32)
    y2 = jax.random.normal(ky, (2, 4, 64, 128), jnp.float32)
    z2 = jax.block_until_ready(fusion2(x2, y2))
    z2_ref = -(x2 - y2) ** 2 + jnp.maximum(x2 + y2, 0.0)
    assert jnp.allclose(z2, z2_ref, atol=1e-6, rtol=1e-6)

    # 3) Lane-misaligned input: Pallas on the bulk + jnp tail (no jnp.pad copy).
    x3 = jax.random.normal(kx, (3, 5, 60, 77), jnp.float32)
    y3 = jax.random.normal(ky, (3, 5, 60, 77), jnp.float32)
    z3 = jax.block_until_ready(fusion2(x3, y3))
    z3_ref = -(x3 - y3) ** 2 + jnp.maximum(x3 + y3, 0.0)
    assert jnp.allclose(z3, z3_ref, atol=1e-6, rtol=1e-6)

    # 4) bf16 input: kernel computes in f32 internally, single cast at store.
    xb32 = jax.random.normal(kx, (2, 8, 64, 128), jnp.float32)
    yb32 = jax.random.normal(ky, (2, 8, 64, 128), jnp.float32)
    xb = xb32.astype(jnp.bfloat16)
    yb = yb32.astype(jnp.bfloat16)
    zb = jax.block_until_ready(fusion2(xb, yb))
    xbf = xb.astype(jnp.float32)
    ybf = yb.astype(jnp.float32)
    zb_ref = (-(xbf - ybf) ** 2 + jnp.maximum(xbf + ybf, 0.0)).astype(jnp.bfloat16)
    assert jnp.allclose(
        zb.astype(jnp.float32), zb_ref.astype(jnp.float32), atol=1e-2, rtol=1e-2
    )

    print("KERNEL_OK")
</pallas_src>

<mosaic_0001>
module attributes {stable_mosaic.version = 11 : i64} {
  func.func @_fusion2_kernel(%arg0: i32, %arg1: memref<128x128xf32, #tpu.memory_space<vmem>>, %arg2: memref<128x128xf32, #tpu.memory_space<vmem>>, %arg3: memref<128x128xf32, #tpu.memory_space<vmem>>) attributes {dimension_semantics = [#tpu.dimension_semantics<parallel>], iteration_bounds = array<i64: 4>, scalar_prefetch = 0 : i64, scratch_operands = 0 : i64, tpu.core_type = #tpu.core_type<tc>, window_params = [{transform_indices = @transform_0, window_bounds = array<i64: 128, 128>}, {transform_indices = @transform_1, window_bounds = array<i64: 128, 128>}, {transform_indices = @transform_2, window_bounds = array<i64: 128, 128>}]} {
    %c0 = arith.constant 0 : index
    %c0_0 = arith.constant 0 : index
    %0 = vector.load %arg1[%c0, %c0_0] : memref<128x128xf32, #tpu.memory_space<vmem>>, vector<128x128xf32>
    %c0_1 = arith.constant 0 : index
    %c0_2 = arith.constant 0 : index
    %1 = vector.load %arg2[%c0_1, %c0_2] : memref<128x128xf32, #tpu.memory_space<vmem>>, vector<128x128xf32>
    %2 = arith.subf %0, %1 : vector<128x128xf32>
    %3 = arith.addf %0, %1 : vector<128x128xf32>
    %cst = arith.constant 0.000000e+00 : f32
    %4 = vector.broadcast %cst : f32 to vector<128x128xf32>
    %5 = arith.maximumf %3, %4 : vector<128x128xf32>
    %6 = arith.mulf %2, %2 : vector<128x128xf32>
    %7 = arith.subf %5, %6 : vector<128x128xf32>
    %c0_3 = arith.constant 0 : index
    %c0_4 = arith.constant 0 : index
    %8 = vector.load %arg3[%c0_3, %c0_4] : memref<128x128xf32, #tpu.memory_space<vmem>>, vector<128x128xf32>
    tpu.vector_store %arg3[%c0_3, %c0_4], %7 {strides = array<i32>} : memref<128x128xf32, #tpu.memory_space<vmem>>, vector<128x128xf32>,
    return
  }
  func.func @transform_0(%arg0: i32) -> (i32, i32) {
    %c0_i32 = arith.constant 0 : i32
    %c0_i32_0 = arith.constant 0 : i32
    return %arg0, %c0_i32 : i32, i32
  }
  func.func @transform_1(%arg0: i32) -> (i32, i32) {
    %c0_i32 = arith.constant 0 : i32
    %c0_i32_0 = arith.constant 0 : i32
    return %arg0, %c0_i32 : i32, i32
  }
  func.func @transform_2(%arg0: i32) -> (i32, i32) {
    %c0_i32 = arith.constant 0 : i32
    %c0_i32_0 = arith.constant 0 : i32
    return %arg0, %c0_i32 : i32, i32
  }
}

</mosaic_0001>

<bundles_post_ra>
// kernel: tpu_custom_call.1
= control target key start
LH: loop header
LB: loop body
LE: loop exit
PB: predicated region body
PF: predicated region fallthrough
CT: control target
= control target key end

     0   :  { %7 = vsyncpa [#allocation3], 0  ;;  %s954_s0 = inlined_call_operand.hbm [shape: f32[512,128], index: 0, kind: input, shape index: {}]   ;;  %s955_s1 = inlined_call_operand.hbm [shape: f32[512,128], index: 1, kind: input, shape index: {}]   ;;  %s956_s2 = inlined_call_operand.hbm [shape: f32[512,128], index: 2, kind: output, shape index: {}]  }
   0x1   :  { %9 = vsyncpa [#allocation3 + $0x1], 0 }
   0x2   :  { %10 = vsyncpa [#allocation6], 0 }
   0x3   :  { %12 = vsyncpa [#allocation6 + $0x1], 0 }
   0x4   :  { %13 = vsyncpa [#allocation4], 0 }
   0x5   :  { %15 = vsyncpa [#allocation4 + $0x1], 0  ;;  %s673_s9 = smov 0   ;;  %s675_s10 = smov 0  }
   0x6   :  { %s677_s11 = smov 0   ;;  %s679_s12 = smov 0  }
   0x7 LB: > { %s694_s13 = sadd.s32 4294967295, %s649_s12   ;;  %s443_s14 = sadd.s32 4294967294, %s649_s12   ;;  %s649_s12 = sphi %s679_s12, %s971_s12   ;;  %s645_s11 = sphi %s677_s11, %s970_s11   ;;  %s641_s10 = sphi %s675_s10, %s969_s10   ;;  %s637_s9 = sphi %s673_s9, %s968_s9  }
   0x8   : > { %s698_s15 = sadd.s32 1, %s649_s12   ;;  %s28_s16 = sadd.s32 1, %s645_s11 }
   0x9   : > { %s25_s17 = ssub.s32 %s649_s12, %s698_s15  ;;  %p35_p0 = scmp.ne.s32.totalorder %s645_s11, %s641_s10 }
   0xa   : > { %p26_p1 = scmp.eq.s32.totalorder %s25_s17, 0  ;;  %p36_p2 = scmp.eq.s32.totalorder %s649_s12, 0 }
   0xb   : > { %p41_p3 = scmp.ne.s32.totalorder %s641_s10, %s637_s9  ;;  %p42_p4 = scmp.eq.s32.totalorder %s694_s13, 0 }
   0xc   : > { %s710_s18 = scalar_select %p26_p1, %s645_s11, %s28_s16  }
   0xd   : > { %p712_p5 = por %p36_p2, %p35_p0  ;;  %p716_p6 = por %p42_p4, %p41_p3 }
   0xe   : > { %p91_p7 = scmp.eq.s32.totalorder %s694_s13, 3  ;;  %p97_p8 = scmp.eq.s32.totalorder %s443_s14, 3 }
   0xf   : > { %s960_s20 = scalar_select %p716_p6, 1, 0 }
  0x10   : > { %p481_p9 = scmp.lt.s32.totalorder %s649_s12, 4  ;;  %p722_p10 = por %p91_p7, %p35_p0 }
  0x11   : > { %p726_p11 = por %p97_p8, %p41_p3  ;;  %s731_s23 = sand.u32 1, %s645_s11  }
  0x12   : > { %s961_s21 = scalar_select %p722_p10, 1, 0 }
  0x13   : > { %s962_s22 = scalar_select %p726_p11, 1, 0 }
  0x14   : > { %s461_s24 = sshll.u32 %s649_s12, 11  ;;  %s446_s25 = sshll.u32 %s731_s23, 7 }
  0x15   : > { %s740_s28 = scalar_lea.hbm %s954_s0, %s461_s24  ;;  %s121_s29 = scalar_lea.vmem [#allocation2], %s446_s25 }
  0x16   : > { %s128_s30 = sshll.u32 %s121_s29, 4  ;;  %p746_p12 = pnand %p481_p9, %p712_p5  ;;  %s750_s30 = int_to_ptr.vmem [resolvable:$true] %s128_s30 }
  0x17   : > { %s118_s4 = scalar_lea.sflag [#allocation3], %s731_s23  ;;  %s519_s5 = scalar_lea.hbm %s740_s28, 2048 }
  0x18   : > { %p520_p13 = scmp.ne.s32.totalorder %s740_s28, %s519_s5  ;;  %p521_p0 = pneg %p746_p12 }
  0x19   : > { %s524_s8 = scalar_lea.hbm %s954_s0, 8192  ;;  %p525_p3 = scmp.lt.u32.totalorder %s740_s28, %s954_s0 }
  0x1a   : > { %p522_p1 = pnand %p521_p0, %p520_p13  ;;  %p526_p4 = scmp.lt.u32.totalorder %s524_s8, %s519_s5 }
  0x1b   : > { %p528_p7 = scmp.lt.u32.totalorder %s519_s5, %s740_s28 }
  0x1c   : > { %p523_p2 = pneg %p522_p1  ;;  %p527_p5 = por %p526_p4, %p525_p3 }
  0x1e   : > { %p529_p8 = por %p528_p7, %p527_p5 }
  0x20   : > { %p530_p9 = pnand %p529_p8, %p523_p2 }
  0x22   : > { %533 = shalt.err (!%p530_p9)
}
  0x23   : > { %s534_s17 = scalar_lea.vmem %s750_s30, 2048  ;;  %s651_s19 = smov [#allocation2]  }
  0x24   : > { %p535_p13 = scmp.ne.s32.totalorder %s750_s30, %s534_s17  ;;  %s539_s26 = sshll.u32 %s651_s19, 4  ;;  %s540_s26 = int_to_ptr.vmem [resolvable:$false] %s539_s26 }
  0x25   : > { %s541_s27 = scalar_lea.vmem %s540_s26, 4096  ;;  %p542_p10 = scmp.lt.s32.totalorder %s750_s30, %s540_s26 }
  0x26   : > { %p537_p1 = pnand %p535_p13, %p521_p0  ;;  %p543_p3 = scmp.lt.s32.totalorder %s541_s27, %s534_s17 }
  0x28   : > { %p538_p11 = pneg %p537_p1  ;;  %p544_p4 = por %p543_p3, %p542_p10 }
  0x2a   : > { %p545_p5 = pnand %p544_p4, %p538_p11 }
  0x2c   : > { %548 = shalt.err (!%p545_p5)
}
  0x2d   : > { %s652_s29 = smov 128   ;;  %s653_s5 = smov 8  }
  0x2e   : > { %473 = dma.hbm_to_vmem [thread:$0]  (!%p746_p12), %s740_s28, 2048, %s750_s30, %s118_s4, %s652_s29, %s652_s29, %s653_s5  }
  0x2f   : > { %p452_p10 = scmp.ge.s32.totalorder %s649_s12, 1  ;;  %p157_p11 = scmp.lt.s32.totalorder %s649_s12, 5 }
  0x30   : > { %s794_s14 = scalar_lea.hbm %s955_s1, %s461_s24  ;;  %s142_s16 = scalar_lea.vmem [#allocation5], %s446_s25 }
  0x31   : > { %p785_p2 = pnand %p452_p10, %p157_p11  ;;  %s149_s17 = sshll.u32 %s142_s16, 4  ;;  %s798_s17 = int_to_ptr.vmem [resolvable:$true] %s149_s17 }
  0x32   : > { %s139_s28 = scalar_lea.sflag [#allocation6], %s731_s23  ;;  %s549_s30 = scalar_lea.hbm %s794_s14, 2048 }
  0x33   : > { %p550_p7 = scmp.ne.s32.totalorder %s794_s14, %s549_s30  ;;  %s554_s24 = scalar_lea.hbm %s955_s1, 8192 }
  0x34   : > { %p555_p13 = scmp.lt.u32.totalorder %s794_s14, %s955_s1  ;;  %p556_p1 = scmp.lt.u32.totalorder %s554_s24, %s549_s30 }
  0x35   : > { %p552_p8 = pnand %p550_p7, %p521_p0  ;;  %p558_p4 = scmp.lt.u32.totalorder %s549_s30, %s794_s14 }
  0x36   : > { %p557_p3 = por %p556_p1, %p555_p13 }
  0x37   : > { %p553_p9 = pneg %p552_p8 }
  0x38   : > { %p559_p5 = por %p558_p4, %p557_p3 }
  0x3a   : > { %p560_p10 = pnand %p559_p5, %p553_p9 }
  0x3c   : > { %563 = shalt.err (!%p560_p10)
}
  0x3d   : > { %s564_s25 = scalar_lea.vmem %s798_s17, 2048  ;;  %s654_s7 = smov [#allocation5]  }
  0x3e   : > { %p565_p11 = scmp.ne.s32.totalorder %s798_s17, %s564_s25  ;;  %s569_s8 = sshll.u32 %s654_s7, 4  ;;  %s570_s8 = int_to_ptr.vmem [resolvable:$false] %s569_s8 }
  0x3f   : > { %s571_s16 = scalar_lea.vmem %s570_s8, 4096  ;;  %p572_p6 = scmp.lt.s32.totalorder %s798_s17, %s570_s8 }
  0x40   : > { %p567_p7 = pnand %p565_p11, %p521_p0  ;;  %p573_p13 = scmp.lt.s32.totalorder %s571_s16, %s564_s25 }
  0x42   : > { %p568_p8 = pneg %p567_p7  ;;  %p574_p1 = por %p573_p13, %p572_p6 }
  0x44   : > { %p575_p3 = pnand %p574_p1, %p568_p8 }
  0x46   : > { %578 = shalt.err (!%p575_p3)
}
  0x47   : > { %476 = dma.hbm_to_vmem [thread:$0]  (!%p746_p12), %s794_s14, 2048, %s798_s17, %s139_s28, %s652_s29, %s652_s29, %s653_s5  }
  0x48   : > { %161 = sbr.rel (%p785_p2) target bundleno = 123 (0x7b), region = 28  ;;  %s832_s30 = sand.u32 (!%p785_p2), 1, %s641_s10  }
  0x49   : > { %s835_s4 = sshll.u32 (!%p785_p2), %s832_s30, 7  ;;  %s164_s3 = scalar_lea.sflag (!%p785_p2), [#allocation3], %s832_s30 }
  0x4a   : > { %s839_s19 = scalar_lea.vmem (!%p785_p2), [#allocation2], %s835_s4  ;;  %p965_p6 = scmp.ne.s32.totalorder (!%p785_p2), %s960_s20, 0 }
  0x4f   : > { %624 = dma.done.wait (%p965_p6), %s164_s3, 2048  }
  0x50   : > { %626 = vsyncadd (%p965_p6), %s164_s3, 4294965248  ;;  %s173_s23 = scalar_lea.sflag [#allocation6], %s832_s30  ;;  %s847_s29 = scalar_lea.vmem [#allocation5], %s835_s4 }
  0x51   : > { %628 = dma.done.wait (%p965_p6), %s173_s23, 2048  }
  0x52   : > { %630 = vsyncadd (%p965_p6), %s173_s23, 4294965248  ;;  %v205_v0 = vld [vmem:[%s839_s19] sm:$0xff]  ;;  %v206_v2 = vld [vmem:[%s839_s19 + $0x8] sm:$0xff]  ;;  %s872_s20 = scalar_lea.vmem [#allocation7], %s835_s4  ;;  %s463_s5 = sshll.u32 %s694_s13, 11 }
  0x53   : > { %v221_v1 = vld [vmem:[%s847_s29] sm:$0xff]  ;;  %v222_v5 = vld [vmem:[%s847_s29 + $0x8] sm:$0xff]  ;;  %v207_v6 = vld [vmem:[%s839_s19 + $0x10] sm:$0xff]  ;;  %s347_s6 = sshll.u32 %s872_s20, 4  ;;  %s907_s28 = scalar_lea.hbm %s956_s2, %s463_s5  ;;  %s909_s6 = int_to_ptr.vmem [resolvable:$true] %s347_s6 }
  0x54   : > { %v237_v3 = vsub.f32 %v205_v0, %v221_v1  ;;  %v253_v4 = vadd.f32 %v221_v1, %v205_v0  ;;  %v223_v7 = vld [vmem:[%s847_s29 + $0x10] sm:$0xff]  ;;  %v238_v8 = vsub.f32 %v206_v2, %v222_v5  ;;  %v254_v9 = vadd.f32 %v222_v5, %v206_v2  ;;  %v208_v12 = vld [vmem:[%s839_s19 + $0x18] sm:$0xff]  ;;  %v209_v14 = vld [vmem:[%s839_s19 + $0x20] sm:$0xff]  ;;  %s334_s13 = scalar_lea.sflag [#allocation4], %s832_s30  ;;  %s579_s24 = scalar_lea.vmem %s909_s6, 2048 }
  0x55   : > { %v239_v10 = vsub.f32 %v207_v6, %v223_v7  ;;  %v255_v11 = vadd.f32 %v223_v7, %v207_v6  ;;  %v224_v13 = vld [vmem:[%s847_s29 + $0x18] sm:$0xff]  ;;  %v225_v19 = vld [vmem:[%s847_s29 + $0x20] sm:$0xff]  ;;  %v210_v20 = vld [vmem:[%s839_s19 + $0x28] sm:$0xff]  ;;  %p580_p12 = scmp.ne.s32.totalorder %s909_s6, %s579_s24  ;;  %p966_p0 = scmp.ne.s32.totalorder %s961_s21, 0 }
  0x56   : > { %v269_v15 = vmax.f32 %v253_v4, 0.0  ;;  %v285_v16 = vmul.f32 %v237_v3, %v237_v3  ;;  %v240_v17 = vsub.f32 %v208_v12, %v224_v13  ;;  %v256_v18 = vadd.f32 %v224_v13, %v208_v12  ;;  %v226_v21 = vld [vmem:[%s847_s29 + $0x28] sm:$0xff]  ;;  %v211_v26 = vld [vmem:[%s839_s19 + $0x30] sm:$0xff]  ;;  %v212_v32 = vld [vmem:[%s839_s19 + $0x38] sm:$0xff]  ;;  %s655_s26 = smov [#allocation7]  }
  0x57   : > { %v270_v22 = vmax.f32 %v254_v9, 0.0  ;;  %v286_v23 = vmul.f32 %v238_v8, %v238_v8  ;;  %v271_v24 = vmax.f32 %v255_v11, 0.0  ;;  %v287_v25 = vmul.f32 %v239_v10, %v239_v10  ;;  %v227_v27 = vld [vmem:[%s847_s29 + $0x30] sm:$0xff]  ;;  %v228_v33 = vld [vmem:[%s847_s29 + $0x38] sm:$0xff]  ;;  %v213_v38 = vld [vmem:[%s839_s19 + $0x40] sm:$0xff]  ;;  %p581_p2 = pnand %p580_p12, %p966_p0  ;;  %s583_s27 = sshll.u32 %s655_s26, 4  ;;  %s584_s27 = int_to_ptr.vmem [resolvable:$false] %s583_s27 }
  0x58   : > { %v301_v28 = vsub.f32 %v269_v15, %v285_v16  ;;  %v272_v29 = vmax.f32 %v256_v18, 0.0  ;;  %v288_v30 = vmul.f32 %v240_v17, %v240_v17  ;;  %v241_v31 = vsub.f32 %v209_v14, %v225_v19  ;;  %v229_v39 = vld [vmem:[%s847_s29 + $0x40] sm:$0xff]  ;;  %v214_v48 = vld [vmem:[%s839_s19 + $0x48] sm:$0xff]  ;;  %v215_v54 = vld [vmem:[%s839_s19 + $0x50] sm:$0xff]  ;;  %s585_s25 = scalar_lea.vmem %s584_s27, 4096  ;;  %p586_p4 = scmp.lt.s32.totalorder %s909_s6, %s584_s27 }
  0x59   : > { %v302_v34 = vsub.f32 %v270_v22, %v286_v23  ;;  %v303_v35 = vsub.f32 %v271_v24, %v287_v25  ;;  %v257_v36 = vadd.f32 %v225_v19, %v209_v14  ;;  %v242_v37 = vsub.f32 %v210_v20, %v226_v21  ;;  %v230_v49 = vld [vmem:[%s847_s29 + $0x48] sm:$0xff]  ;;  %v231_v55 = vld [vmem:[%s847_s29 + $0x50] sm:$0xff]  ;;  %v216_v60 = vld [vmem:[%s839_s19 + $0x58] sm:$0xff]  ;;  %p582_p9 = pneg %p581_p2  ;;  %p587_p5 = scmp.lt.s32.totalorder %s585_s25, %s579_s24 }
  0x5a   : > { %317 = vst [vmem:[%s872_s20] sm:$0xff] %v301_v28  ;;  %v304_v40 = vsub.f32 %v272_v29, %v288_v30  ;;  %v289_v41 = vmul.f32 %v241_v31, %v241_v31  ;;  %v258_v42 = vadd.f32 %v226_v21, %v210_v20  ;;  %v243_v43 = vsub.f32 %v211_v26, %v227_v27  ;;  %v232_v61 = vld [vmem:[%s847_s29 + $0x58] sm:$0xff]  ;;  %v217_v6 = vld [vmem:[%s839_s19 + $0x60] sm:$0xff]  ;;  %v218_v12 = vld [vmem:[%s839_s19 + $0x68] sm:$0xff] }
  0x5b   : > { %318 = vst [vmem:[%s872_s20 + $0x8] sm:$0xff] %v302_v34  ;;  %319 = vst [vmem:[%s872_s20 + $0x10] sm:$0xff] %v303_v35  ;;  %v273_v44 = vmax.f32 %v257_v36, 0.0  ;;  %v290_v45 = vmul.f32 %v242_v37, %v242_v37  ;;  %v259_v46 = vadd.f32 %v227_v27, %v211_v26  ;;  %v244_v47 = vsub.f32 %v212_v32, %v228_v33  ;;  %v233_v7 = vld [vmem:[%s847_s29 + $0x60] sm:$0xff]  ;;  %v234_v13 = vld [vmem:[%s847_s29 + $0x68] sm:$0xff]  ;;  %p588_p10 = por %p587_p5, %p586_p4 }
  0x5c   : > { %320 = vst [vmem:[%s872_s20 + $0x18] sm:$0xff] %v304_v40  ;;  %v274_v50 = vmax.f32 %v258_v42, 0.0  ;;  %v291_v51 = vmul.f32 %v243_v43, %v243_v43  ;;  %v260_v52 = vadd.f32 %v228_v33, %v212_v32  ;;  %v245_v53 = vsub.f32 %v213_v38, %v229_v39  ;;  %v219_v18 = vld [vmem:[%s839_s19 + $0x70] sm:$0xff]  ;;  %v220_v28 = vld [vmem:[%s839_s19 + $0x78] sm:$0xff] }
  0x5d   : > { %v305_v56 = vsub.f32 %v273_v44, %v289_v41  ;;  %v275_v57 = vmax.f32 %v259_v46, 0.0  ;;  %v292_v58 = vmul.f32 %v244_v47, %v244_v47  ;;  %v261_v59 = vadd.f32 %v229_v39, %v213_v38  ;;  %v235_v19 = vld [vmem:[%s847_s29 + $0x70] sm:$0xff]  ;;  %v236_v29 = vld [vmem:[%s847_s29 + $0x78] sm:$0xff]  ;;  %p589_p11 = pnand %p588_p10, %p582_p9 }
  0x5e   : > { %v306_v62 = vsub.f32 %v274_v50, %v290_v45  ;;  %v276_v63 = vmax.f32 %v260_v52, 0.0  ;;  %v293_v0 = vmul.f32 %v245_v53, %v245_v53  ;;  %v246_v1 = vsub.f32 %v214_v48, %v230_v49 }
  0x5f   : > { %321 = vst [vmem:[%s872_s20 + $0x20] sm:$0xff] %v305_v56  ;;  %v307_v2 = vsub.f32 %v275_v57, %v291_v51  ;;  %v277_v3 = vmax.f32 %v261_v59, 0.0  ;;  %v262_v4 = vadd.f32 %v230_v49, %v214_v48  ;;  %v247_v5 = vsub.f32 %v215_v54, %v231_v55 }
  0x60   : > { %322 = vst [vmem:[%s872_s20 + $0x28] sm:$0xff] %v306_v62  ;;  %v308_v8 = vsub.f32 %v276_v63, %v292_v58  ;;  %v294_v9 = vmul.f32 %v246_v1, %v246_v1  ;;  %v263_v10 = vadd.f32 %v231_v55, %v215_v54  ;;  %v248_v11 = vsub.f32 %v216_v60, %v232_v61 }
  0x61   : > { %323 = vst [vmem:[%s872_s20 + $0x30] sm:$0xff] %v307_v2  ;;  %v309_v14 = vsub.f32 %v277_v3, %v293_v0  ;;  %v278_v15 = vmax.f32 %v262_v4, 0.0  ;;  %v295_v16 = vmul.f32 %v247_v5, %v247_v5  ;;  %v264_v17 = vadd.f32 %v232_v61, %v216_v60 }
  0x62   : > { %324 = vst [vmem:[%s872_s20 + $0x38] sm:$0xff] %v308_v8  ;;  %v279_v20 = vmax.f32 %v263_v10, 0.0  ;;  %v296_v21 = vmul.f32 %v248_v11, %v248_v11  ;;  %v249_v22 = vsub.f32 %v217_v6, %v233_v7  ;;  %v265_v23 = vadd.f32 %v233_v7, %v217_v6 }
  0x63   : > { %325 = vst [vmem:[%s872_s20 + $0x40] sm:$0xff] %v309_v14  ;;  %v310_v24 = vsub.f32 %v278_v15, %v294_v9  ;;  %v280_v25 = vmax.f32 %v264_v17, 0.0  ;;  %v250_v26 = vsub.f32 %v218_v12, %v234_v13  ;;  %v266_v27 = vadd.f32 %v234_v13, %v218_v12 }
  0x64   : > { %v311_v30 = vsub.f32 %v279_v20, %v295_v16  ;;  %v281_v31 = vmax.f32 %v265_v23, 0.0  ;;  %v297_v32 = vmul.f32 %v249_v22, %v249_v22  ;;  %v251_v33 = vsub.f32 %v219_v18, %v235_v19 }
  0x65   : > { %326 = vst [vmem:[%s872_s20 + $0x48] sm:$0xff] %v310_v24  ;;  %v312_v34 = vsub.f32 %v280_v25, %v296_v21  ;;  %v282_v35 = vmax.f32 %v266_v27, 0.0  ;;  %v298_v36 = vmul.f32 %v250_v26, %v250_v26  ;;  %v267_v37 = vadd.f32 %v235_v19, %v219_v18 }
  0x66   : > { %327 = vst [vmem:[%s872_s20 + $0x50] sm:$0xff] %v311_v30  ;;  %v313_v38 = vsub.f32 %v281_v31, %v297_v32  ;;  %v299_v39 = vmul.f32 %v251_v33, %v251_v33  ;;  %v252_v40 = vsub.f32 %v220_v28, %v236_v29  ;;  %v268_v41 = vadd.f32 %v236_v29, %v220_v28 }
  0x67   : > { %328 = vst [vmem:[%s872_s20 + $0x58] sm:$0xff] %v312_v34  ;;  %v314_v42 = vsub.f32 %v282_v35, %v298_v36  ;;  %v283_v43 = vmax.f32 %v267_v37, 0.0 }
  0x68   : > { %329 = vst [vmem:[%s872_s20 + $0x60] sm:$0xff] %v313_v38  ;;  %v284_v44 = vmax.f32 %v268_v41, 0.0  ;;  %v300_v45 = vmul.f32 %v252_v40, %v252_v40 }
  0x69   : > { %330 = vst [vmem:[%s872_s20 + $0x68] sm:$0xff] %v314_v42  ;;  %v315_v46 = vsub.f32 %v283_v43, %v299_v39 }
  0x6a   : > { %v316_v47 = vsub.f32 %v284_v44, %v300_v45 }
  0x6b   : > { %331 = vst [vmem:[%s872_s20 + $0x70] sm:$0xff] %v315_v46 }
  0x6c   : > { %332 = vst [vmem:[%s872_s20 + $0x78] sm:$0xff] %v316_v47 }
  0x6d   : > { %592 = shalt.err (!%p589_p11)
}
  0x6e   : > { %s593_s7 = scalar_lea.hbm %s907_s28, 2048  ;;  %s597_s4 = scalar_lea.hbm %s956_s2, 8192 }
  0x6f   : > { %p594_p7 = scmp.ne.s32.totalorder %s907_s28, %s593_s7  ;;  %p598_p1 = scmp.lt.u32.totalorder %s907_s28, %s956_s2 }
  0x70   : > { %p599_p3 = scmp.lt.u32.totalorder %s597_s4, %s593_s7  ;;  %p601_p12 = scmp.lt.u32.totalorder %s593_s7, %s907_s28 }
  0x71   : > { %p595_p8 = pnand %p594_p7, %p966_p0 }
  0x72   : > { %p600_p6 = por %p599_p3, %p598_p1 }
  0x73   : > { %p596_p13 = pneg %p595_p8 }
  0x74   : > { %p602_p2 = por %p601_p12, %p600_p6 }
  0x76   : > { %p603_p9 = pnand %p602_p2, %p596_p13 }
  0x78   : > { %606 = shalt.err (!%p603_p9)
}
  0x79   : > { %s656_s23 = smov 128   ;;  %s657_s29 = smov 8  }
  0x7a   : > { %468 = dma.vmem_to_hbm [thread:$0]  (%p966_p0), %s909_s6, 2048, %s907_s28, %s334_s13, %s656_s23, %s656_s23, %s657_s29  }
  0x7b PF: > { %p482_p4 = scmp.ge.s32.totalorder %s649_s12, 2  ;;  %s362_s20 = sand.u32 1, %s637_s9  }
  0x7c   : > { %p967_p5 = scmp.ne.s32.totalorder %s962_s22, 0  ;;  %s363_s5 = scalar_lea.sflag [#allocation4], %s362_s20 }
  0x7e   : > { %p478_p10 = pnand %p482_p4, %p967_p5 }
  0x80   : > { %632 = dma.done.wait (!%p478_p10), %s363_s5, 2048  }
  0x81   : > { %634 = vsyncadd (!%p478_p10), %s363_s5, 4294965248  ;;  %p18_p11 = scmp.ge.s32.totalorder %s698_s15, 6   ;;  %s968_s9 = smov %s641_s10 }
  0x82   : > { %s969_s10 = smov %s645_s11  ;;  %s970_s11 = smov %s710_s18 }
  0x83   : > { %s971_s12 = smov %s698_s15  ;;  %20 = sbr.rel (!%p18_p11) target bundleno = 7 (0x7), region = 86 }
  0x8a   :  { %368 = vsyncpa [#allocation3], 1 }
  0x8b   :  { %370 = vsyncpa [#allocation3 + $0x1], 1 }
  0x8c   :  { %371 = vsyncpa [#allocation6], 1 }
  0x8d   :  { %373 = vsyncpa [#allocation6 + $0x1], 1 }
  0x8e   :  { %374 = vsyncpa [#allocation4], 1 }
  0x8f   :  { %376 = vsyncpa [#allocation4 + $0x1], 1 }

</bundles_post_ra>
